<compile_context>
chip_gen: v7x
topology: tpu7x:2x2x1
jax: 0.10.0
libtpu: 0.0.40
codegen_flags: <defaults>
</compile_context>

<pallas_src>
import functools

import jax
import jax.numpy as jnp
from jax.experimental import pallas as pl
from jax.experimental.pallas import tpu as pltpu


def _apply_act(y, act, alpha):
    if act == "relu":
        return jnp.maximum(y, 0.0)
    elif act == "prelu":
        # PyTorch PReLU: max(0, x) + alpha * min(0, x)
        return jnp.where(y >= 0.0, y, alpha * y)
    else:
        raise ValueError(f"unknown activation {act!r}")


# --------------------------- conv kernel ------------------------------------
def _conv_fused_kernel(x_ref, w_ref, b_ref, *rest, act, n_batch, n_kh, n_kw,
                       wp, lout, cin):
    # x_ref:     (N, Cin, Hp*Wp) VMEM -- x zero-padded bottom/right, spatially flat
    # w_ref:     (Cout, KH*KW*Cin)    -- tap-major flattened weights
    # b_ref:     (Cout, 1)
    # rest = (alpha_ref, o_ref, patch_ref) for prelu, (o_ref, patch_ref) for relu
    # o_ref:     (N, Cout, lout) with lout a multiple of 128 (lane-dense stores)
    # patch_ref: VMEM scratch (KH*KW*Cin, N*lout) -- fused im2col slab
    if act == "prelu":
        alpha_ref, o_ref, patch_ref = rest
        alpha = alpha_ref[0]
    else:
        o_ref, patch_ref = rest
        alpha = None

    # Fused im2col: 9 statically-shifted flat slices per batch element are
    # copied into the scratch slab (tap-major rows, batch-n slab at lane
    # offset n*lout).  These are the same shifted loads the old per-tap dots
    # paid; they now feed a single matmul instead of 18.
    for n in range(n_batch):                      # static unroll (N=2)
        for kh in range(n_kh):
            for kw in range(n_kw):
                t = kh * n_kw + kw
                off = kh * wp + kw
                patch_ref[t * cin:(t + 1) * cin, n * lout:(n + 1) * lout] = (
                    x_ref[n, :, off:off + lout])

    # ONE MXU dot: (Cout, K) x (K, N*lout), K = 9*Cin = 90 <= 128
    # (single pass on v5e's 128-deep MXU; v6e/v7x are 256-deep).
    res = jnp.dot(w_ref[...], patch_ref[...],
                  preferred_element_type=jnp.float32)          # (Cout, N*lout)
    res = res + b_ref[...]                                     # bias (Cout,1)
    res = _apply_act(res, act, alpha)
    for n in range(n_batch):                                   # lane-dense vst
        o_ref[n] = res[:, n * lout:(n + 1) * lout].astype(o_ref.dtype)


# --------------------------- pool kernel ------------------------------------
def _pool_kernel(win_ref, *rest, act, n_win):
    # win_ref: (KH*KW, N, Lpad) VMEM (lane-dense, zero-padded tail)
    # o_ref:   (N, Lpad)              (lane-dense, unmasked store)
    if act == "prelu":
        alpha_ref, o_ref = rest
        alpha = alpha_ref[0]
    else:
        (o_ref,) = rest
        alpha = None
    m = win_ref[0]
    for k in range(1, n_win):                     # unrolled max reduce (VPU)
        m = jnp.maximum(m, win_ref[k])
    o_ref[...] = _apply_act(m, act, alpha).astype(o_ref.dtype)


# --------------------------- jitted forwards --------------------------------
@functools.partial(jax.jit, static_argnames=("act",))
def _conv_forward(x, conv_w, conv_b, prelu_alpha, *, act):
    N, Cin, H, W = x.shape
    Cout, _, KH, KW = conv_w.shape
    Hout, Wout = H - KH + 1, W - KW + 1
    Hp, Wp = H + KH - 1, W + KW - 1               # zero-pad bottom/right
    lp = Hp * Wp
    # lane-dense kernel output width (multiple of 128) covering Hout*Wp
    lout = ((Hout * Wp + 127) // 128) * 128
    # shifted flat slices must stay in bounds
    assert lout + (KH - 1) * Wp + (KW - 1) <= lp

    # wrapper layout glue only (fused under jit): pad + flatten, weight reshape
    xf = jnp.pad(x, ((0, 0), (0, 0), (0, KH - 1), (0, KW - 1))).reshape(N, Cin, lp)
    w_cat = jnp.transpose(conv_w, (0, 2, 3, 1)).reshape(Cout, KH * KW * Cin)
    b2 = conv_b.reshape(Cout, 1)

    kernel = functools.partial(_conv_fused_kernel, act=act, n_batch=N, n_kh=KH,
                               n_kw=KW, wp=Wp, lout=lout, cin=Cin)
    inputs = [xf, w_cat, b2]
    in_specs = [pl.BlockSpec(memory_space=pltpu.MemorySpace.VMEM)] * 3
    if act == "prelu":
        inputs.append(prelu_alpha)
        in_specs.append(pl.BlockSpec(memory_space=pltpu.MemorySpace.SMEM))

    flops = 2 * Cout * (KH * KW * Cin) * (N * lout)
    bytes_accessed = 4 * (xf.size + w_cat.size + b2.size + N * Cout * lout)
    out = pl.pallas_call(
        kernel,
        out_shape=jax.ShapeDtypeStruct((N, Cout, lout), jnp.float32),
        in_specs=in_specs,
        out_specs=pl.BlockSpec(memory_space=pltpu.MemorySpace.VMEM),
        scratch_shapes=[pltpu.VMEM((KH * KW * Cin, N * lout), jnp.float32)],
        cost_estimate=pl.CostEstimate(flops=flops, transcendentals=0,
                                      bytes_accessed=bytes_accessed),
    )(*inputs)
    # crop padded flat spatial back to (N, Cout, Hout, Wout)
    out = out[:, :, :Hout * Wp].reshape(N, Cout, Hout, Wp)
    return out[:, :, :, :Wout]


@functools.partial(jax.jit, static_argnames=("act",))
def _pool_forward(x, prelu_alpha, *, act):
    N, C, H, W = x.shape
    K = 3  # nn.MaxPool2d(3): kernel=3, stride=3, no padding
    Hout, Wout = (H - K) // K + 1, (W - K) // K + 1
    HWo = Hout * Wout
    lpad = ((C * HWo + 127) // 128) * 128         # lane-dense width (256)

    # TODO(synk): fully in-kernel 3x3/stride-3 window extraction needs
    # lane-strided loads that are not portably supported by Mosaic; extraction
    # stays as wrapper layout glue, but fused under the same jit (one XLA op
    # feeding a lane-dense (9, N, 256) slab).
    wins = [x[:, :, kh:kh + K * Hout:K, kw:kw + K * Wout:K]
            for kh in range(K) for kw in range(K)]
    wins = jnp.stack(wins, axis=0).reshape(K * K, N, C * HWo)
    wins = jnp.pad(wins, ((0, 0), (0, 0), (0, lpad - C * HWo)))   # zero tail

    kernel = functools.partial(_pool_kernel, act=act, n_win=K * K)
    inputs = [wins]
    in_specs = [pl.BlockSpec(memory_space=pltpu.MemorySpace.VMEM)]
    if act == "prelu":
        inputs.append(prelu_alpha)
        in_specs.append(pl.BlockSpec(memory_space=pltpu.MemorySpace.SMEM))

    out = pl.pallas_call(
        kernel,
        out_shape=jax.ShapeDtypeStruct((N, lpad), jnp.float32),
        in_specs=in_specs,
        out_specs=pl.BlockSpec(memory_space=pltpu.MemorySpace.VMEM),
        cost_estimate=pl.CostEstimate(
            flops=N * lpad * (K * K - 1), transcendentals=0,
            bytes_accessed=4 * (wins.size + N * lpad)),
    )(*inputs)
    return out[:, :C * HWo].reshape(N, C, Hout, Wout)


class MyModuleDictPallas:
    """JAX/Pallas equivalent of the PyTorch myModuleDict."""

    def __init__(self, key):
        kw, kb = jax.random.split(key)
        cout, cin, kh, kw_ = 10, 10, 3, 3
        fan_in = cin * kh * kw_
        bound = 1.0 / (fan_in ** 0.5)
        # deterministic synthetic init (uniform, PyTorch-style bound)
        self.conv_w = jax.random.uniform(kw, (cout, cin, kh, kw_), jnp.float32,
                                         -bound, bound)
        self.conv_b = jax.random.uniform(kb, (cout,), jnp.float32, -bound, bound)
        self.prelu_alpha = jnp.array([0.25], dtype=jnp.float32)  # nn.PReLU() default

    def __call__(self, x, choice, act):
        if choice == "conv":
            return _conv_forward(x, self.conv_w, self.conv_b, self.prelu_alpha,
                                 act=act)
        elif choice == "pool":
            return _pool_forward(x, self.prelu_alpha, act=act)
        raise ValueError(f"unknown choice {choice!r}")


# ---- pure-JAX reference for correctness ------------------------------------
def _ref_forward(model, x, choice, act):
    if choice == "conv":
        y = jax.lax.conv_general_dilated(
            x, model.conv_w, window_strides=(1, 1), padding="VALID",
            dimension_numbers=("NCHW", "OIHW", "NCHW"))
        y = y + model.conv_b[None, :, None, None]
    else:
        y = jax.lax.reduce_window(x, -jnp.inf, jax.lax.max,
                                  (1, 1, 3, 3), (1, 1, 3, 3), "VALID")
    if act == "relu":
        return jnp.maximum(y, 0.0)
    return jnp.where(y >= 0.0, y, model.prelu_alpha[0] * y)


if __name__ == "__main__":
    key = jax.random.PRNGKey(0)
    kx, kp = jax.random.split(key)
    model = MyModuleDictPallas(kp)

    # Conv2d(10, 10, 3) implies 10 input channels.
    x = jax.random.normal(kx, (2, 10, 16, 16), dtype=jnp.float32)

    expected_shapes = {"conv": (2, 10, 14, 14), "pool": (2, 10, 5, 5)}
    # pool path is exact (max + mul only); conv tolerance covers the MXU's
    # default fp32 matmul precision across generations.
    tol = {"conv": 2e-2, "pool": 1e-5}
    for choice in ("conv", "pool"):
        for act in ("relu", "prelu"):
            y = jax.block_until_ready(model(x, choice, act))
            assert y.shape == expected_shapes[choice], (choice, act, y.shape)
            ref = _ref_forward(model, x, choice, act)
            err = float(jnp.max(jnp.abs(y - ref)))
            assert err < tol[choice], (choice, act, err)

    print("KERNEL_OK")
</pallas_src>

<mosaic_0001>
module attributes {stable_mosaic.version = 11 : i64} {
  func.func @_conv_fused_kernel(%arg0: memref<2x10x324xf32, #tpu.memory_space<vmem>>, %arg1: memref<10x90xf32, #tpu.memory_space<vmem>>, %arg2: memref<10x1xf32, #tpu.memory_space<vmem>>, %arg3: memref<2x10x256xf32, #tpu.memory_space<vmem>>, %arg4: memref<90x512xf32, #tpu.memory_space<vmem>>) attributes {dimension_semantics = [], scalar_prefetch = 0 : i64, scratch_operands = 1 : i64, tpu.core_type = #tpu.core_type<tc>} {
    %c0 = arith.constant 0 : index
    %c0_0 = arith.constant 0 : index
    %c0_1 = arith.constant 0 : index
    %0 = vector.load %arg0[%c0, %c0_0, %c0_1] : memref<2x10x324xf32, #tpu.memory_space<vmem>>, vector<1x10x256xf32>
    %1 = vector.shape_cast %0 : vector<1x10x256xf32> to vector<10x256xf32>
    %c0_2 = arith.constant 0 : index
    %c0_3 = arith.constant 0 : index
    %2 = vector.load %arg4[%c0_2, %c0_3] : memref<90x512xf32, #tpu.memory_space<vmem>>, vector<10x256xf32>
    tpu.vector_store %arg4[%c0_2, %c0_3], %1 {strides = array<i32>} : memref<90x512xf32, #tpu.memory_space<vmem>>, vector<10x256xf32>,
    %c0_4 = arith.constant 0 : index
    %c0_5 = arith.constant 0 : index
    %c1 = arith.constant 1 : index
    %3 = vector.load %arg0[%c0_4, %c0_5, %c1] : memref<2x10x324xf32, #tpu.memory_space<vmem>>, vector<1x10x256xf32>
    %4 = vector.shape_cast %3 : vector<1x10x256xf32> to vector<10x256xf32>
    %c10 = arith.constant 10 : index
    %c0_6 = arith.constant 0 : index
    %5 = vector.load %arg4[%c10, %c0_6] : memref<90x512xf32, #tpu.memory_space<vmem>>, vector<10x256xf32>
    tpu.vector_store %arg4[%c10, %c0_6], %4 {strides = array<i32>} : memref<90x512xf32, #tpu.memory_space<vmem>>, vector<10x256xf32>,
    %c0_7 = arith.constant 0 : index
    %c0_8 = arith.constant 0 : index
    %c2 = arith.constant 2 : index
    %6 = vector.load %arg0[%c0_7, %c0_8, %c2] : memref<2x10x324xf32, #tpu.memory_space<vmem>>, vector<1x10x256xf32>
    %7 = vector.shape_cast %6 : vector<1x10x256xf32> to vector<10x256xf32>
    %c20 = arith.constant 20 : index
    %c0_9 = arith.constant 0 : index
    %8 = vector.load %arg4[%c20, %c0_9] : memref<90x512xf32, #tpu.memory_space<vmem>>, vector<10x256xf32>
    tpu.vector_store %arg4[%c20, %c0_9], %7 {strides = array<i32>} : memref<90x512xf32, #tpu.memory_space<vmem>>, vector<10x256xf32>,
    %c0_10 = arith.constant 0 : index
    %c0_11 = arith.constant 0 : index
    %c18 = arith.constant 18 : index
    %9 = vector.load %arg0[%c0_10, %c0_11, %c18] : memref<2x10x324xf32, #tpu.memory_space<vmem>>, vector<1x10x256xf32>
    %10 = vector.shape_cast %9 : vector<1x10x256xf32> to vector<10x256xf32>
    %c30 = arith.constant 30 : index
    %c0_12 = arith.constant 0 : index
    %11 = vector.load %arg4[%c30, %c0_12] : memref<90x512xf32, #tpu.memory_space<vmem>>, vector<10x256xf32>
    tpu.vector_store %arg4[%c30, %c0_12], %10 {strides = array<i32>} : memref<90x512xf32, #tpu.memory_space<vmem>>, vector<10x256xf32>,
    %c0_13 = arith.constant 0 : index
    %c0_14 = arith.constant 0 : index
    %c19 = arith.constant 19 : index
    %12 = vector.load %arg0[%c0_13, %c0_14, %c19] : memref<2x10x324xf32, #tpu.memory_space<vmem>>, vector<1x10x256xf32>
    %13 = vector.shape_cast %12 : vector<1x10x256xf32> to vector<10x256xf32>
    %c40 = arith.constant 40 : index
    %c0_15 = arith.constant 0 : index
    %14 = vector.load %arg4[%c40, %c0_15] : memref<90x512xf32, #tpu.memory_space<vmem>>, vector<10x256xf32>
    tpu.vector_store %arg4[%c40, %c0_15], %13 {strides = array<i32>} : memref<90x512xf32, #tpu.memory_space<vmem>>, vector<10x256xf32>,
    %c0_16 = arith.constant 0 : index
    %c0_17 = arith.constant 0 : index
    %c20_18 = arith.constant 20 : index
    %15 = vector.load %arg0[%c0_16, %c0_17, %c20_18] : memref<2x10x324xf32, #tpu.memory_space<vmem>>, vector<1x10x256xf32>
    %16 = vector.shape_cast %15 : vector<1x10x256xf32> to vector<10x256xf32>
    %c50 = arith.constant 50 : index
    %c0_19 = arith.constant 0 : index
    %17 = vector.load %arg4[%c50, %c0_19] : memref<90x512xf32, #tpu.memory_space<vmem>>, vector<10x256xf32>
    tpu.vector_store %arg4[%c50, %c0_19], %16 {strides = array<i32>} : memref<90x512xf32, #tpu.memory_space<vmem>>, vector<10x256xf32>,
    %c0_20 = arith.constant 0 : index
    %c0_21 = arith.constant 0 : index
    %c36 = arith.constant 36 : index
    %18 = vector.load %arg0[%c0_20, %c0_21, %c36] : memref<2x10x324xf32, #tpu.memory_space<vmem>>, vector<1x10x256xf32>
    %19 = vector.shape_cast %18 : vector<1x10x256xf32> to vector<10x256xf32>
    %c60 = arith.constant 60 : index
    %c0_22 = arith.constant 0 : index
    %20 = vector.load %arg4[%c60, %c0_22] : memref<90x512xf32, #tpu.memory_space<vmem>>, vector<10x256xf32>
    tpu.vector_store %arg4[%c60, %c0_22], %19 {strides = array<i32>} : memref<90x512xf32, #tpu.memory_space<vmem>>, vector<10x256xf32>,
    %c0_23 = arith.constant 0 : index
    %c0_24 = arith.constant 0 : index
    %c37 = arith.constant 37 : index
    %21 = vector.load %arg0[%c0_23, %c0_24, %c37] : memref<2x10x324xf32, #tpu.memory_space<vmem>>, vector<1x10x256xf32>
    %22 = vector.shape_cast %21 : vector<1x10x256xf32> to vector<10x256xf32>
    %c70 = arith.constant 70 : index
    %c0_25 = arith.constant 0 : index
    %23 = vector.load %arg4[%c70, %c0_25] : memref<90x512xf32, #tpu.memory_space<vmem>>, vector<10x256xf32>
    tpu.vector_store %arg4[%c70, %c0_25], %22 {strides = array<i32>} : memref<90x512xf32, #tpu.memory_space<vmem>>, vector<10x256xf32>,
    %c0_26 = arith.constant 0 : index
    %c0_27 = arith.constant 0 : index
    %c38 = arith.constant 38 : index
    %24 = vector.load %arg0[%c0_26, %c0_27, %c38] : memref<2x10x324xf32, #tpu.memory_space<vmem>>, vector<1x10x256xf32>
    %25 = vector.shape_cast %24 : vector<1x10x256xf32> to vector<10x256xf32>
    %c80 = arith.constant 80 : index
    %c0_28 = arith.constant 0 : index
    %26 = vector.load %arg4[%c80, %c0_28] : memref<90x512xf32, #tpu.memory_space<vmem>>, vector<10x256xf32>
    tpu.vector_store %arg4[%c80, %c0_28], %25 {strides = array<i32>} : memref<90x512xf32, #tpu.memory_space<vmem>>, vector<10x256xf32>,
    %c1_29 = arith.constant 1 : index
    %c0_30 = arith.constant 0 : index
    %c0_31 = arith.constant 0 : index
    %27 = vector.load %arg0[%c1_29, %c0_30, %c0_31] : memref<2x10x324xf32, #tpu.memory_space<vmem>>, vector<1x10x256xf32>
    %28 = vector.shape_cast %27 : vector<1x10x256xf32> to vector<10x256xf32>
    %c0_32 = arith.constant 0 : index
    %c256 = arith.constant 256 : index
    %29 = vector.load %arg4[%c0_32, %c256] : memref<90x512xf32, #tpu.memory_space<vmem>>, vector<10x256xf32>
    tpu.vector_store %arg4[%c0_32, %c256], %28 {strides = array<i32>} : memref<90x512xf32, #tpu.memory_space<vmem>>, vector<10x256xf32>,
    %c1_33 = arith.constant 1 : index
    %c0_34 = arith.constant 0 : index
    %c1_35 = arith.constant 1 : index
    %30 = vector.load %arg0[%c1_33, %c0_34, %c1_35] : memref<2x10x324xf32, #tpu.memory_space<vmem>>, vector<1x10x256xf32>
    %31 = vector.shape_cast %30 : vector<1x10x256xf32> to vector<10x256xf32>
    %c10_36 = arith.constant 10 : index
    %c256_37 = arith.constant 256 : index
    %32 = vector.load %arg4[%c10_36, %c256_37] : memref<90x512xf32, #tpu.memory_space<vmem>>, vector<10x256xf32>
    tpu.vector_store %arg4[%c10_36, %c256_37], %31 {strides = array<i32>} : memref<90x512xf32, #tpu.memory_space<vmem>>, vector<10x256xf32>,
    %c1_38 = arith.constant 1 : index
    %c0_39 = arith.constant 0 : index
    %c2_40 = arith.constant 2 : index
    %33 = vector.load %arg0[%c1_38, %c0_39, %c2_40] : memref<2x10x324xf32, #tpu.memory_space<vmem>>, vector<1x10x256xf32>
    %34 = vector.shape_cast %33 : vector<1x10x256xf32> to vector<10x256xf32>
    %c20_41 = arith.constant 20 : index
    %c256_42 = arith.constant 256 : index
    %35 = vector.load %arg4[%c20_41, %c256_42] : memref<90x512xf32, #tpu.memory_space<vmem>>, vector<10x256xf32>
    tpu.vector_store %arg4[%c20_41, %c256_42], %34 {strides = array<i32>} : memref<90x512xf32, #tpu.memory_space<vmem>>, vector<10x256xf32>,
    %c1_43 = arith.constant 1 : index
    %c0_44 = arith.constant 0 : index
    %c18_45 = arith.constant 18 : index
    %36 = vector.load %arg0[%c1_43, %c0_44, %c18_45] : memref<2x10x324xf32, #tpu.memory_space<vmem>>, vector<1x10x256xf32>
    %37 = vector.shape_cast %36 : vector<1x10x256xf32> to vector<10x256xf32>
    %c30_46 = arith.constant 30 : index
    %c256_47 = arith.constant 256 : index
    %38 = vector.load %arg4[%c30_46, %c256_47] : memref<90x512xf32, #tpu.memory_space<vmem>>, vector<10x256xf32>
    tpu.vector_store %arg4[%c30_46, %c256_47], %37 {strides = array<i32>} : memref<90x512xf32, #tpu.memory_space<vmem>>, vector<10x256xf32>,
    %c1_48 = arith.constant 1 : index
    %c0_49 = arith.constant 0 : index
    %c19_50 = arith.constant 19 : index
    %39 = vector.load %arg0[%c1_48, %c0_49, %c19_50] : memref<2x10x324xf32, #tpu.memory_space<vmem>>, vector<1x10x256xf32>
    %40 = vector.shape_cast %39 : vector<1x10x256xf32> to vector<10x256xf32>
    %c40_51 = arith.constant 40 : index
    %c256_52 = arith.constant 256 : index
    %41 = vector.load %arg4[%c40_51, %c256_52] : memref<90x512xf32, #tpu.memory_space<vmem>>, vector<10x256xf32>
    tpu.vector_store %arg4[%c40_51, %c256_52], %40 {strides = array<i32>} : memref<90x512xf32, #tpu.memory_space<vmem>>, vector<10x256xf32>,
    %c1_53 = arith.constant 1 : index
    %c0_54 = arith.constant 0 : index
    %c20_55 = arith.constant 20 : index
    %42 = vector.load %arg0[%c1_53, %c0_54, %c20_55] : memref<2x10x324xf32, #tpu.memory_space<vmem>>, vector<1x10x256xf32>
    %43 = vector.shape_cast %42 : vector<1x10x256xf32> to vector<10x256xf32>
    %c50_56 = arith.constant 50 : index
    %c256_57 = arith.constant 256 : index
    %44 = vector.load %arg4[%c50_56, %c256_57] : memref<90x512xf32, #tpu.memory_space<vmem>>, vector<10x256xf32>
    tpu.vector_store %arg4[%c50_56, %c256_57], %43 {strides = array<i32>} : memref<90x512xf32, #tpu.memory_space<vmem>>, vector<10x256xf32>,
    %c1_58 = arith.constant 1 : index
    %c0_59 = arith.constant 0 : index
    %c36_60 = arith.constant 36 : index
    %45 = vector.load %arg0[%c1_58, %c0_59, %c36_60] : memref<2x10x324xf32, #tpu.memory_space<vmem>>, vector<1x10x256xf32>
    %46 = vector.shape_cast %45 : vector<1x10x256xf32> to vector<10x256xf32>
    %c60_61 = arith.constant 60 : index
    %c256_62 = arith.constant 256 : index
    %47 = vector.load %arg4[%c60_61, %c256_62] : memref<90x512xf32, #tpu.memory_space<vmem>>, vector<10x256xf32>
    tpu.vector_store %arg4[%c60_61, %c256_62], %46 {strides = array<i32>} : memref<90x512xf32, #tpu.memory_space<vmem>>, vector<10x256xf32>,
    %c1_63 = arith.constant 1 : index
    %c0_64 = arith.constant 0 : index
    %c37_65 = arith.constant 37 : index
    %48 = vector.load %arg0[%c1_63, %c0_64, %c37_65] : memref<2x10x324xf32, #tpu.memory_space<vmem>>, vector<1x10x256xf32>
    %49 = vector.shape_cast %48 : vector<1x10x256xf32> to vector<10x256xf32>
    %c70_66 = arith.constant 70 : index
    %c256_67 = arith.constant 256 : index
    %50 = vector.load %arg4[%c70_66, %c256_67] : memref<90x512xf32, #tpu.memory_space<vmem>>, vector<10x256xf32>
    tpu.vector_store %arg4[%c70_66, %c256_67], %49 {strides = array<i32>} : memref<90x512xf32, #tpu.memory_space<vmem>>, vector<10x256xf32>,
    %c1_68 = arith.constant 1 : index
    %c0_69 = arith.constant 0 : index
    %c38_70 = arith.constant 38 : index
    %51 = vector.load %arg0[%c1_68, %c0_69, %c38_70] : memref<2x10x324xf32, #tpu.memory_space<vmem>>, vector<1x10x256xf32>
    %52 = vector.shape_cast %51 : vector<1x10x256xf32> to vector<10x256xf32>
    %c80_71 = arith.constant 80 : index
    %c256_72 = arith.constant 256 : index
    %53 = vector.load %arg4[%c80_71, %c256_72] : memref<90x512xf32, #tpu.memory_space<vmem>>, vector<10x256xf32>
    tpu.vector_store %arg4[%c80_71, %c256_72], %52 {strides = array<i32>} : memref<90x512xf32, #tpu.memory_space<vmem>>, vector<10x256xf32>,
    %c0_73 = arith.constant 0 : index
    %c0_74 = arith.constant 0 : index
    %54 = vector.load %arg1[%c0_73, %c0_74] : memref<10x90xf32, #tpu.memory_space<vmem>>, vector<10x90xf32>
    %c0_75 = arith.constant 0 : index
    %c0_76 = arith.constant 0 : index
    %55 = vector.load %arg4[%c0_75, %c0_76] : memref<90x512xf32, #tpu.memory_space<vmem>>, vector<90x512xf32>
    %cst = arith.constant dense<0.000000e+00> : vector<10x512xf32>
    %56 = tpu.matmul %54, %55, %cst {dimension_numbers = #tpu.dot_dimension_numbers<[1], [0], [0], [1], [0, 0, 1, 1], [], []>} : vector<10x90xf32>, vector<90x512xf32>, vector<10x512xf32> -> vector<10x512xf32>
    %c0_77 = arith.constant 0 : index
    %c0_78 = arith.constant 0 : index
    %57 = vector.load %arg2[%c0_77, %c0_78] : memref<10x1xf32, #tpu.memory_space<vmem>>, vector<10x1xf32>
    %58 = vector.broadcast %57 : vector<10x1xf32> to vector<10x512xf32>
    %59 = arith.addf %56, %58 : vector<10x512xf32>
    %cst_79 = arith.constant 0.000000e+00 : f32
    %60 = vector.broadcast %cst_79 : f32 to vector<10x512xf32>
    %61 = arith.maximumf %59, %60 : vector<10x512xf32>
    %62 = vector.extract_strided_slice %61 {offsets = [0, 0], sizes = [10, 256], strides = [1, 1]} : vector<10x512xf32> to vector<10x256xf32>
    %c0_80 = arith.constant 0 : index
    %c0_81 = arith.constant 0 : index
    %c0_82 = arith.constant 0 : index
    %63 = vector.load %arg3[%c0_80, %c0_81, %c0_82] : memref<2x10x256xf32, #tpu.memory_space<vmem>>, vector<1x10x256xf32>
    %64 = vector.shape_cast %63 : vector<1x10x256xf32> to vector<10x256xf32>
    %65 = vector.shape_cast %62 : vector<10x256xf32> to vector<1x10x256xf32>
    tpu.vector_store %arg3[%c0_80, %c0_81, %c0_82], %65 {strides = array<i32>} : memref<2x10x256xf32, #tpu.memory_space<vmem>>, vector<1x10x256xf32>,
    %66 = vector.extract_strided_slice %61 {offsets = [0, 256], sizes = [10, 256], strides = [1, 1]} : vector<10x512xf32> to vector<10x256xf32>
    %c1_83 = arith.constant 1 : index
    %c0_84 = arith.constant 0 : index
    %c0_85 = arith.constant 0 : index
    %67 = vector.load %arg3[%c1_83, %c0_84, %c0_85] : memref<2x10x256xf32, #tpu.memory_space<vmem>>, vector<1x10x256xf32>
    %68 = vector.shape_cast %67 : vector<1x10x256xf32> to vector<10x256xf32>
    %69 = vector.shape_cast %66 : vector<10x256xf32> to vector<1x10x256xf32>
    tpu.vector_store %arg3[%c1_83, %c0_84, %c0_85], %69 {strides = array<i32>} : memref<2x10x256xf32, #tpu.memory_space<vmem>>, vector<1x10x256xf32>,
    return
  }
}

</mosaic_0001>

<bundles_post_ra>
// kernel: _conv_forward.1
= control target key start
LH: loop header
LB: loop body
LE: loop exit
PB: predicated region body
PF: predicated region fallthrough
CT: control target
= control target key end

     0   :  { %s1110_s24 = smov 127   ;;  %vm34_vm0 = vcmask 1041408   ;;  %vm81_vm1 = vcmask 1043456   ;;  %vm128_vm2 = vcmask 1045504   ;;  %s1111_s8 = smov 126   ;;  %vm56_vm3 = vcmask 1039360   ;;  %s1762_s0 = inlined_call_operand.vmem [shape: f32[2,10,324], index: 0, kind: input, shape index: {}]   ;;  %s1763_s2 = inlined_call_operand.vmem [shape: f32[10,1], index: 2, kind: input, shape index: {}]   ;;  %s1764_s1 = inlined_call_operand.vmem [shape: f32[10,90], index: 1, kind: input, shape index: {}]   ;;  %s1765_s3 = inlined_call_operand.vmem [shape: f32[2,10,256], index: 3, kind: output, shape index: {}]  }
   0x1   :  { %v1144_v0 = vld [vmem:[%s1762_s0 + $0x38] sm:$0xff]  ;;  %v1149_v1 = vld [vmem:[%s1762_s0 + $0x8] sm:$0xff]  ;;  %v1154_v2 = vld [vmem:[%s1762_s0 + $0x40] sm:$0xff]  ;;  %s1112_s10 = smov 110   ;;  %s1115_s27 = smov 92   ;;  %vm103_vm4 = vcmask 1031168  }
   0x2   :  { %v1157_v3 = vrot.slane %v1144_v0, 6  ;;  %v1160_v4 = vrot.slane %v1149_v1, 6  ;;  %v1165_v5 = vld [vmem:[%s1762_s0 + $0x10] sm:$0xff]  ;;  %v1175_v7 = vld [vmem:[%s1762_s0] sm:$0xff]  ;;  %v1182_v8 = vrot.slane %v1154_v2, 6  ;;  %v1223_v21 = vrot.slane %v1149_v1, 4 }
   0x3   :  { %v1170_v6 = vld [vmem:[%s1762_s0 + $0x30] sm:$0xff]  ;;  %v1185_v9 = vrot.slane %v1165_v5, 6  ;;  %v27_v10 = vld [vmem:[%s1762_s0 + $0x28] sm:$0x3]  ;;  %v26_v11 = vld [vmem:[%s1762_s0 + $0x20] sm:$0x3] }
   0x4   :  { %407 = vrot.lane.b32.xlu1 %v1157_v3, %s1110_s24  ;;  %46 = vrot.lane.b32.xlu0 %v1160_v4, %s1110_s24  ;;  %v1198_v12 = vrot.slane %v1170_v6, 6  ;;  %v1201_v13 = vrot.slane %v1175_v7, 6  ;;  %v42_v14 = vrot.slane %v27_v10, 6  ;;  %v40_v15 = vrot.slane %v26_v11, 6  ;;  %v74_v18 = vld [vmem:[%s1762_s0 + $0x28] sm:$0x3] }
   0x5   :  { %v73_v19 = vld [vmem:[%s1762_s0 + $0x20] sm:$0x3]  ;;  %v1220_v20 = vrot.slane %v1165_v5, 4  ;;  %v89_v22 = vrot.slane %v74_v18, 4  ;;  %v990_v24 = vld [vmem:[%s1762_s0 + $0x58] sm:$0x3] }
   0x6   :  { %v43_v16 = vsel %vm34_vm0, %v1185_v9, %v42_v14  ;;  %v41_v17 = vsel %vm34_vm0, %v1160_v4, %v40_v15  ;;  %v87_v23 = vrot.slane %v73_v19, 4  ;;  %v1233_v25 = vrot.slane %v1165_v5, 2  ;;  %v989_v26 = vld [vmem:[%s1762_s0 + $0x50] sm:$0x3]  ;;  %v17_v32 = vld [vmem:[%s1762_s0 + $0x20] sm:$0x3] }
   0x7   :  { %v984_v27 = vld [vmem:[%s1762_s0 + $0x50] sm:$0x3]  ;;  %v90_v28 = vsel %vm81_vm1, %v1220_v20, %v89_v22  ;;  %v1246_v30 = vrot.slane %v1149_v1, 2  ;;  %v1249_v31 = vrot.slane %v1154_v2, 4  ;;  %v251_v33 = vld [vmem:[%s1762_s0 + $0x28] sm:$0x3] }
   0x8   :  { %409 = vrot.lane.b32.xlu1 %v1182_v8, %s1110_s24  ;;  %48 = vrot.lane.b32.xlu0 %v1185_v9, %s1110_s24  ;;  %v88_v29 = vsel %vm81_vm1, %v1223_v21, %v87_v23  ;;  %383 = vst [vmem:[#allocation2 + $0x38] sm:$0x3] %v984_v27  ;;  %v403_v34 = vrot.slane %v990_v24, 6  ;;  %21 = vst [vmem:[#allocation2 + $0x28] sm:$0x3] %v17_v32  ;;  %v265_v35 = vrot.slane %v251_v33, 4 }
   0x9   :  { %v250_v36 = vld [vmem:[%s1762_s0 + $0x20] sm:$0x3]  ;;  %v983_v37 = vld [vmem:[%s1762_s0 + $0x48] sm:$0x3]  ;;  %v401_v38 = vrot.slane %v989_v26, 6  ;;  %v1272_v42 = vrot.slane %v1144_v0, 4 }
   0xa   :  { %v263_v39 = vrot.slane %v250_v36, 4  ;;  %382 = vst [vmem:[#allocation2 + $0x30] sm:$0x3] %v983_v37  ;;  %v16_v40 = vld [vmem:[%s1762_s0 + $0x18] sm:$0x3]  ;;  %v1276_v43 = vsel %vm81_vm1, %v1220_v20, %v265_v35  ;;  %v1295_v52 = vrot.slane %v1154_v2, 2  ;;  %v404_v61 = vsel %vm34_vm0, %v1182_v8, %v403_v34 }
   0xb   :  { %v297_v41 = vld [vmem:[%s1762_s0 + $0x28] sm:$0x3]  ;;  %20 = vst [vmem:[#allocation2 + $0x20] sm:$0x3] %v16_v40  ;;  %v296_v45 = vld [vmem:[%s1762_s0 + $0x20] sm:$0x3]  ;;  %v402_v11 = vsel %vm34_vm0, %v1157_v3, %v401_v38 }
   0xc   :  { %405 = vrot.lane.b32.xlu1 %v1198_v12, %s1110_s24  ;;  %44 = vrot.lane.b32.xlu0 %v1201_v13, %s1110_s24  ;;  %v311_v44 = vrot.slane %v297_v41, 2  ;;  %v1020_v46 = vld [vmem:[%s1762_s0 + $0x58] sm:$0x3]  ;;  %v1286_v47 = vsel %vm81_vm1, %v1223_v21, %v263_v39  ;;  %v309_v48 = vrot.slane %v296_v45, 2  ;;  %v1019_v50 = vld [vmem:[%s1762_s0 + $0x50] sm:$0x3] }
   0xd   :  { %v619_v49 = vrot.slane %v1020_v46, 4  ;;  %v1026_v51 = vld [vmem:[%s1762_s0 + $0x58] sm:$0x3]  ;;  %v617_v54 = vrot.slane %v1019_v50, 4  ;;  %v1025_v56 = vld [vmem:[%s1762_s0 + $0x50] sm:$0x3] }
   0xe   :  { %v1299_v53 = vsel %vm128_vm2, %v1233_v25, %v311_v44  ;;  %v664_v55 = vrot.slane %v1026_v51, 2  ;;  %v1305_v57 = vrot.slane %v1144_v0, 2  ;;  %v1309_v58 = vsel %vm128_vm2, %v1246_v30, %v309_v48  ;;  %v249_v10 = vld [vmem:[%s1762_s0 + $0x18] sm:$0x3]  ;;  %v995_v15 = vld [vmem:[%s1762_s0 + $0x50] sm:$0x3] }
   0xf   :  { %v1313_v59 = vsel %vm81_vm1, %v1249_v31, %v619_v49  ;;  %v662_v60 = vrot.slane %v1025_v56, 2  ;;  %v1323_v62 = vsel %vm81_vm1, %v1272_v42, %v617_v54  ;;  %v996_v14 = vld [vmem:[%s1762_s0 + $0x58] sm:$0x3]  ;;  %v261_v18 = vrot.slane %v249_v10, 4  ;;  %v1018_v24 = vld [vmem:[%s1762_s0 + $0x48] sm:$0x3] }
  0x10   :  { %54 = vrot.lane.b32.xlu1 %v43_v16, %s1110_s24  ;;  %52 = vrot.lane.b32.xlu0 %v41_v17, %s1110_s24  ;;  %v1327_v63 = vsel %vm128_vm2, %v1295_v52, %v664_v55  ;;  %v1341_v16 = vrot.slane %v1175_v7, 4  ;;  %v448_v22 = vrot.slane %v996_v14, 4  ;;  %v446_v23 = vrot.slane %v995_v15, 4  ;;  %v295_v26 = vld [vmem:[%s1762_s0 + $0x18] sm:$0x3]  ;;  %s1117_s18 = smov 90  }
  0x11   :  { %v1345_v17 = vsel %vm128_vm2, %v1305_v57, %v662_v60  ;;  %v1360_v27 = vrot.slane %v1175_v7, 2  ;;  %v307_v32 = vrot.slane %v295_v26, 2  ;;  %v1024_v35 = vld [vmem:[%s1762_s0 + $0x48] sm:$0x3]  ;;  %v1385_v38 = vrot.slane %v1170_v6, 2 }
  0x12   :  { %v1349_v19 = vsel %vm81_vm1, %v1341_v16, %v261_v18  ;;  %v449_v36 = vsel %vm81_vm1, %v1249_v31, %v448_v22  ;;  %v447_v37 = vsel %vm81_vm1, %v1272_v42, %v446_v23  ;;  %v660_v39 = vrot.slane %v1024_v35, 2  ;;  %v25_v40 = vld [vmem:[%s1762_s0 + $0x18] sm:$0x3]  ;;  %v988_v49 = vld [vmem:[%s1762_s0 + $0x48] sm:$0x3] }
  0x13   :  { %v1371_v34 = vsel %vm128_vm2, %v1360_v27, %v307_v32  ;;  %v38_v44 = vrot.slane %v25_v40, 6  ;;  %v72_v45 = vld [vmem:[%s1762_s0 + $0x18] sm:$0x3]  ;;  %v399_v51 = vrot.slane %v988_v49, 6  ;;  %v994_v54 = vld [vmem:[%s1762_s0 + $0x48] sm:$0x3] }
  0x14   :  { %95 = vrot.lane.b32.xlu1 %v1220_v20, %s1111_s8  ;;  %93 = vrot.lane.b32.xlu0 %v1223_v21, %s1111_s8  ;;  %v1392_v41 = vsel %vm128_vm2, %v1385_v38, %v660_v39  ;;  %v85_v48 = vrot.slane %v72_v45, 4  ;;  %v444_v56 = vrot.slane %v994_v54, 4  ;;  %v121_v60 = vld [vmem:[%s1762_s0 + $0x28] sm:$0x3]  ;;  %v1002_v22 = vld [vmem:[%s1762_s0 + $0x58] sm:$0x3] }
  0x15   :  { %v39_v46 = vsel %vm34_vm0, %v1201_v13, %v38_v44  ;;  %v400_v55 = vsel %vm34_vm0, %v1198_v12, %v399_v51  ;;  %v1001_v23 = vld [vmem:[%s1762_s0 + $0x50] sm:$0x3]  ;;  %v119_v35 = vld [vmem:[%s1762_s0 + $0x18] sm:$0x3]  ;;  %v168_v45 = vld [vmem:[%s1762_s0 + $0x28] sm:$0x3] }
  0x16   :  { %v86_v50 = vsel %vm81_vm1, %v1341_v16, %v85_v48  ;;  %v491_v26 = vrot.slane %v1001_v23, 2  ;;  %v205_v48 = vld [vmem:[%s1762_s0 + $0x28] sm:$0x3]  ;;  %v204_v49 = vld [vmem:[%s1762_s0 + $0x20] sm:$0x3]  ;;  %vm150_vm5 = vcmask 900096  }
  0x17   :  { %v217_v51 = vrot.slane %v204_v49, 6  ;;  %vm187_vm6 = vcmask 891904   ;;  %vm233_vm7 = vcmask 883712   ;;  %vm279_vm8 = vcmask 752640  }
  0x18   :  { %101 = vrot.lane.b32.xlu1 %v90_v28, %s1111_s8  ;;  %99 = vrot.lane.b32.xlu0 %v88_v29, %s1111_s8  ;;  %v1363_v28 = vrot.slane %v1170_v6, 4  ;;  %v615_v29 = vrot.slane %v1018_v24, 4  ;;  %v493_v24 = vrot.slane %v1002_v22, 2  ;;  %v492_v32 = vsel %vm128_vm2, %v1305_v57, %v491_v26 }
  0x19   :  { %vm325_vm9 = vcmask 744448   ;;  %vm362_vm10 = vcmask 736256   ;;  %vm1120_vm11 = vmmov 1  }
  0x1a   :  { %v1367_v33 = vsel %vm81_vm1, %v1363_v28, %v615_v29  ;;  %v445_v10 = vsel %vm81_vm1, %v1363_v28, %v444_v56  ;;  %v494_v29 = vsel %vm128_vm2, %v1295_v52, %v493_v24  ;;  %v1008_v56 = vld [vmem:[%s1762_s0 + $0x58] sm:$0x3]  ;;  %vm1710_vm12 = vmpackc.low %vm34_vm0, %vm1120_vm11 }
  0x1c   :  { %142 = vrot.lane.b32.xlu1 %v1233_v25, %s1112_s10  ;;  %140 = vrot.lane.b32.xlu0 %v1246_v30, %s1112_s10 }
  0x20   :  { %415 = vrot.lane.b32.xlu1 %v404_v61, %s1110_s24  ;;  %413 = vrot.lane.b32.xlu0 %v402_v11, %s1110_s24  ;;  %v120_v61 = vld [vmem:[%s1762_s0 + $0x20] sm:$0x3]  ;;  %v136_v11 = vrot.slane %v121_v60, 2  ;;  %v1013_v60 = vld [vmem:[%s1762_s0 + $0x50] sm:$0x3] }
  0x21   :  { %v134_v14 = vrot.slane %v120_v61, 2 }
  0x22   :  { %v137_v15 = vsel %vm128_vm2, %v1233_v25, %v136_v11  ;;  %v203_v11 = vld [vmem:[%s1762_s0 + $0x18] sm:$0x3] }
  0x23   :  { %v135_v18 = vsel %vm128_vm2, %v1246_v30, %v134_v14  ;;  %v215_v14 = vrot.slane %v203_v11, 6 }
  0x24   :  { %454 = vrot.lane.b32.xlu1 %v1249_v31, %s1111_s8  ;;  %452 = vrot.lane.b32.xlu0 %v1272_v42, %s1111_s8 }
  0x28   :  { %460 = vrot.lane.b32.xlu1 %v449_v36, %s1111_s8  ;;  %458 = vrot.lane.b32.xlu0 %v447_v37, %s1111_s8  ;;  %v132_v36 = vrot.slane %v119_v35, 2  ;;  %v1000_v37 = vld [vmem:[%s1762_s0 + $0x48] sm:$0x3] }
  0x29   :  { %v489_v40 = vrot.slane %v1000_v37, 2 }
  0x2a   :  { %v133_v39 = vsel %vm128_vm2, %v1360_v27, %v132_v36 }
  0x2b   :  { %v490_v44 = vsel %vm128_vm2, %v1385_v38, %v489_v40 }
  0x2c   :  { %499 = vrot.lane.b32.xlu1 %v1295_v52, %s1112_s10  ;;  %497 = vrot.lane.b32.xlu0 %v1305_v57, %s1112_s10 }
  0x30   :  { %91 = vrot.lane.b32.xlu1 %v1341_v16, %s1111_s8  ;;  %50 = vrot.lane.b32.xlu0 %v39_v46, %s1110_s24  ;;  %v167_v46 = vld [vmem:[%s1762_s0 + $0x20] sm:$0x3] }
  0x34   :  { %138 = vrot.lane.b32.xlu1 %v1360_v27, %s1112_s10  ;;  %97 = vrot.lane.b32.xlu0 %v86_v50, %s1111_s8  ;;  %v219_v50 = vrot.slane %v205_v48, 6 }
  0x36   :  { %v220_v54 = vsel %vm34_vm0, %v1185_v9, %v219_v50 }
  0x38   :  { %450 = vrot.lane.b32.xlu1 %v1363_v28, %s1111_s8  ;;  %411 = vrot.lane.b32.xlu0 %v400_v55, %s1110_s24  ;;  %v218_v55 = vsel %vm34_vm0, %v1160_v4, %v217_v51 }
  0x3c   :  { %495 = vrot.lane.b32.xlu1 %v1385_v38, %s1112_s10  ;;  %456 = vrot.lane.b32.xlu0 %v445_v10, %s1111_s8  ;;  %s1113_s8 = smov 109  }
  0x40   :  { %148 = vrot.lane.b32.xlu1 %v137_v15, %s1112_s10  ;;  %146 = vrot.lane.b32.xlu0 %v135_v18, %s1112_s10  ;;  %v216_v18 = vsel %vm34_vm0, %v1201_v13, %v215_v14 }
  0x44   :  { %179 = vrot.lane.b32.xlu1 %v1165_v5, %s1113_s8  ;;  %177 = vrot.lane.b32.xlu0 %v1149_v1, %s1113_s8 }
  0x48   :  { %505 = vrot.lane.b32.xlu1 %v494_v29, %s1112_s10  ;;  %503 = vrot.lane.b32.xlu0 %v492_v32, %s1112_s10 }
  0x4c   :  { %535 = vrot.lane.b32.xlu1 %v1154_v2, %s1113_s8  ;;  %533 = vrot.lane.b32.xlu0 %v1144_v0, %s1113_s8 }
  0x50   :  { %175 = vrot.lane.b32.xlu1 %v1175_v7, %s1113_s8  ;;  %144 = vrot.lane.b32.xlu0 %v133_v39, %s1112_s10 }
  0x54   :  { %531 = vrot.lane.b32.xlu1 %v1170_v6, %s1113_s8  ;;  %501 = vrot.lane.b32.xlu0 %v490_v44, %s1112_s10  ;;  %s1114_s10 = smov 108  }
  0x58   :  { %185 = vrot.lane.b32.xlu1 %v168_v45, %s1113_s8  ;;  %183 = vrot.lane.b32.xlu0 %v167_v46, %s1113_s8 }
  0x5c   :  { %225 = vrot.lane.b32.xlu1 %v1185_v9, %s1114_s10  ;;  %223 = vrot.lane.b32.xlu0 %v1160_v4, %s1114_s10  ;;  %v1007_v9 = vld [vmem:[%s1762_s0 + $0x50] sm:$0x3]  ;;  %v1014_v4 = vld [vmem:[%s1762_s0 + $0x58] sm:$0x3] }
  0x60   :  { %231 = vrot.lane.b32.xlu1 %v220_v54, %s1114_s10  ;;  %229 = vrot.lane.b32.xlu0 %v218_v55, %s1114_s10 }
  0x64   :  { %271 = vrot.lane.b32.xlu1 %v1220_v20, %s1115_s27  ;;  %269 = vrot.lane.b32.xlu0 %v1223_v21, %s1115_s27  ;;  %v574_v20 = vrot.slane %v1014_v4, 6  ;;  %v572_v21 = vrot.slane %v1013_v60, 6 }
  0x66   :  { %v575_v61 = vsel %vm34_vm0, %v1182_v8, %v574_v20  ;;  %v573_v10 = vsel %vm34_vm0, %v1157_v3, %v572_v21 }
  0x68   :  { %541 = vrot.lane.b32.xlu1 %v1008_v56, %s1113_s8  ;;  %539 = vrot.lane.b32.xlu0 %v1007_v9, %s1113_s8 }
  0x6c   :  { %580 = vrot.lane.b32.xlu1 %v1182_v8, %s1114_s10  ;;  %578 = vrot.lane.b32.xlu0 %v1157_v3, %s1114_s10  ;;  %v166_v8 = vld [vmem:[%s1762_s0 + $0x18] sm:$0x3] }
  0x70   :  { %586 = vrot.lane.b32.xlu1 %v575_v61, %s1114_s10  ;;  %584 = vrot.lane.b32.xlu0 %v573_v10, %s1114_s10 }
  0x74   :  { %625 = vrot.lane.b32.xlu1 %v1249_v31, %s1115_s27  ;;  %623 = vrot.lane.b32.xlu0 %v1272_v42, %s1115_s27  ;;  %v1012_v42 = vld [vmem:[%s1762_s0 + $0x48] sm:$0x3] }
  0x75   :  { %v570_v26 = vrot.slane %v1012_v42, 6 }
  0x76   :  { %v408_v3 = vpop.permute.xlu1 %407  ;;  %v47_v15 = vpop.permute.xlu0 %46 }
  0x78   :  { %221 = vrot.lane.b32.xlu1 %v1201_v13, %s1114_s10  ;;  %181 = vrot.lane.b32.xlu0 %v166_v8, %s1113_s8  ;;  %v1006_v13 = vld [vmem:[%s1762_s0 + $0x48] sm:$0x3] }
  0x7a   :  { %v410_v31 = vpop.permute.xlu1 %409  ;;  %v49_v22 = vpop.permute.xlu0 %48 }
  0x7b   :  { %v418_v23 = vsel %vm56_vm3, %v408_v3, %v410_v31  ;;  %v58_v24 = vsel %vm56_vm3, %v47_v15, %v49_v22 }
  0x7c   :  { %426 = vst [vmem:[#allocation2 + $0x38] sm:$0xfc] %v418_v23  ;;  %66 = vst [vmem:[#allocation2 + $0x28] sm:$0xfc] %v58_v24  ;;  %267 = vrot.lane.b32.xlu1 %v1341_v16, %s1115_s27  ;;  %227 = vrot.lane.b32.xlu0 %v216_v18, %s1114_s10  ;;  %v571_v16 = vsel %vm34_vm0, %v1198_v12, %v570_v26 }
  0x7e   :  { %v406_v29 = vpop.permute.xlu1 %405  ;;  %v45_v32 = vpop.permute.xlu0 %44 }
  0x7f   :  { %v417_v35 = vsel %vm56_vm3, %v406_v29, %v408_v3  ;;  %v57_v36 = vsel %vm56_vm3, %v45_v32, %v47_v15 }
  0x80   :  { %425 = vst [vmem:[#allocation2 + $0x30] sm:$0xfc] %v417_v35  ;;  %65 = vst [vmem:[#allocation2 + $0x20] sm:$0xfc] %v57_v36  ;;  %576 = vrot.lane.b32.xlu1 %v1198_v12, %s1114_s10  ;;  %537 = vrot.lane.b32.xlu0 %v1006_v13, %s1113_s8  ;;  %s1116_s8 = smov 91  }
  0x82   :  { %v55_v37 = vpop.permute.xlu1 %54  ;;  %v1562_v39 = vpop.permute.xlu0 %52 }
  0x83   :  { %v60_v40 = vsel %vm56_vm3, %v1562_v39, %v55_v37  ;;  %v735_v44 = vld [vmem:[#allocation2 + $0x38] sm:$0xff]  ;;  %v733_v45 = vld [vmem:[#allocation2 + $0x28] sm:$0xff] }
  0x84   :  { %68 = vst [vmem:[#allocation2 + $0x48] sm:$0xf] %v60_v40  ;;  %621 = vrot.lane.b32.xlu1 %v1363_v28, %s1115_s27  ;;  %582 = vrot.lane.b32.xlu0 %v571_v16, %s1114_s10  ;;  %v1071_v46 = vpack.c.bf16 %v735_v44, %v1144_v0  ;;  %v1045_v48 = vpack.c.bf16 %v733_v45, %v1149_v1  ;;  %v1032_v40 = vld [vmem:[%s1762_s0 + $0x58] sm:$0x3]  ;;  %v1031_v44 = vld [vmem:[%s1762_s0 + $0x50] sm:$0x3] }
  0x86   :  { %1072 = vmatprep.subr.bf16.mxu1 %v1071_v46  ;;  %v96_v12 = vpop.permute.xlu1 %95  ;;  %v94_v49 = vpop.permute.xlu0 %93  ;;  %1046 = vmatprep.subr.bf16.mxu0 %v1045_v48 }
  0x87   :  { %v105_v50 = vsel %vm103_vm4, %v94_v49, %v96_v12  ;;  %v734_v51 = vld [vmem:[#allocation2 + $0x30] sm:$0xff]  ;;  %v732_v54 = vld [vmem:[#allocation2 + $0x20] sm:$0xff] }
  0x88   :  { %113 = vst [vmem:[#allocation2 + $0x48] sm:$0xf0] %v105_v50  ;;  %277 = vrot.lane.b32.xlu1 %v1276_v43, %s1115_s27  ;;  %275 = vrot.lane.b32.xlu0 %v1286_v47, %s1115_s27  ;;  %v1073_v28 = vpack.c.bf16 %v734_v51, %v1170_v6  ;;  %v1047_v55 = vpack.c.bf16 %v732_v54, %v1175_v7  ;;  %v341_v50 = vld [vmem:[%s1762_s0 + $0x18] sm:$0x3] }
  0x8a   :  { %1074 = vmatpush1.bf16.msra.mxu1 %v1073_v28  ;;  %v102_v56 = vpop.permute.xlu1 %101  ;;  %v100_v9 = vpop.permute.xlu0 %99  ;;  %1048 = vmatpush1.bf16.msra.mxu0 %v1047_v55  ;;  %v1030_v55 = vld [vmem:[%s1762_s0 + $0x48] sm:$0x3] }
  0x8b   :  { %v107_v4 = vsel %vm103_vm4, %v100_v9, %v102_v56 }
  0x8c   :  { %115 = vst [vmem:[#allocation2 + $0x68] sm:$0x3f] %v107_v4  ;;  %317 = vrot.lane.b32.xlu1 %v1233_v25, %s1116_s8  ;;  %315 = vrot.lane.b32.xlu0 %v1246_v30, %s1116_s8 }
  0x8e   :  { %v143_v43 = vpop.permute.xlu1 %142  ;;  %v141_v47 = vpop.permute.xlu0 %140 }
  0x8f   :  { %v152_v60 = vsel %vm150_vm5, %v141_v47, %v143_v43  ;;  %v737_v11 = vld [vmem:[#allocation2 + $0x48] sm:$0xff]  ;;  %v1118_v43 = vmov 0.0  }
  0x90   :  { %160 = vst [vmem:[#allocation2 + $0x68] sm:$0xc0] %v152_v60  ;;  %323 = vrot.lane.b32.xlu1 %v1299_v53, %s1116_s8  ;;  %321 = vrot.lane.b32.xlu0 %v1309_v58, %s1116_s8 }
  0x91   :  { %870 = vmatprep.mubr.f32.mxu0 %v1118_v43  ;;  %947 = vmatprep.mubr.f32.mxu1 %v1118_v43 }
  0x92   :  { %v416_v20 = vpop.permute.xlu1 %415  ;;  %v414_v21 = vpop.permute.xlu0 %413 }
  0x93   :  { %v420_v61 = vsel %vm56_vm3, %v414_v21, %v416_v20 }
  0x94   :  { %428 = vst [vmem:[#allocation2 + $0x58] sm:$0xf] %v420_v61  ;;  %631 = vrot.lane.b32.xlu1 %v1313_v59, %s1115_s27  ;;  %629 = vrot.lane.b32.xlu0 %v1323_v62, %s1115_s27 }
  0x96   :  { %v455_v25 = vpop.permute.xlu1 %454  ;;  %v453_v30 = vpop.permute.xlu0 %452 }
  0x97   :  { %v463_v10 = vsel %vm103_vm4, %v453_v30, %v455_v25  ;;  %v741_v53 = vld [vmem:[#allocation2 + $0x68] sm:$0xff] }
  0x98   :  { %471 = vst [vmem:[#allocation2 + $0x58] sm:$0xf0] %v463_v10  ;;  %670 = vrot.lane.b32.xlu1 %v1295_v52, %s1116_s8  ;;  %668 = vrot.lane.b32.xlu0 %v1305_v57, %s1116_s8  ;;  %v1049_v58 = vpack.c.bf16 %v741_v53, %v737_v11  ;;  %v1119_v10 = vmov 0   ;;  %v776_v11 = vld [vmem:[%s1763_s2] sm:$0xff] }
  0x99   :  { %1108 = vset.pattern.permute.xlu0 %v1119_v10  ;;  %1109 = vset.pattern.permute.xlu1 %v1119_v10 }
  0x9a   :  { %v461_v8 = vpop.permute.xlu1 %460  ;;  %v459_v14 = vpop.permute.xlu0 %458  ;;  %1050 = vmatprep.subr.bf16.mxu0 %v1049_v58 }
  0x9b   :  { %v465_v59 = vsel %vm103_vm4, %v459_v14, %v461_v8 }
  0x9c   :  { %473 = vst [vmem:[#allocation2 + $0x78] sm:$0x3f] %v465_v59  ;;  %676 = vrot.lane.b32.xlu1 %v1327_v63, %s1116_s8  ;;  %674 = vrot.lane.b32.xlu0 %v1345_v17, %s1116_s8 }
  0x9e   :  { %v500_v62 = vpop.permute.xlu1 %499  ;;  %v498_v3 = vpop.permute.xlu0 %497 }
  0x9f   :  { %v508_v52 = vsel %vm150_vm5, %v498_v3, %v500_v62  ;;  %v739_v22 = vld [vmem:[#allocation2 + $0x58] sm:$0xff] }
  0xa0   :  { %516 = vst [vmem:[#allocation2 + $0x78] sm:$0xc0] %v508_v52  ;;  %313 = vrot.lane.b32.xlu1 %v1360_v27, %s1116_s8  ;;  %273 = vrot.lane.b32.xlu0 %v1349_v19, %s1115_s27 }
  0xa2   :  { %v92_v57 = vpop.permute.xlu1 %91  ;;  %v51_v15 = vpop.permute.xlu0 %50 }
  0xa3   :  { %v104_v18 = vsel %vm103_vm4, %v92_v57, %v94_v49  ;;  %v59_v63 = vsel %vm56_vm3, %v51_v15, %v1562_v39 }
  0xa4   :  { %112 = vst [vmem:[#allocation2 + $0x40] sm:$0xf0] %v104_v18  ;;  %67 = vst [vmem:[#allocation2 + $0x40] sm:$0xf] %v59_v63  ;;  %627 = vrot.lane.b32.xlu1 %v1367_v33, %s1115_s27  ;;  %319 = vrot.lane.b32.xlu0 %v1371_v34, %s1116_s8 }
  0xa6   :  { %v139_v17 = vpop.permute.xlu1 %138  ;;  %v98_v27 = vpop.permute.xlu0 %97 }
  0xa7   :  { %v151_v31 = vsel %vm150_vm5, %v139_v17, %v141_v47  ;;  %v106_v19 = vsel %vm103_vm4, %v98_v27, %v100_v9  ;;  %v743_v42 = vld [vmem:[#allocation2 + $0x78] sm:$0xff] }
  0xa8   :  { %159 = vst [vmem:[#allocation2 + $0x60] sm:$0xc0] %v151_v31  ;;  %114 = vst [vmem:[#allocation2 + $0x60] sm:$0x3f] %v106_v19  ;;  %672 = vrot.lane.b32.xlu1 %v1392_v41, %s1116_s8  ;;  %666 = vrot.lane.b32.xlu0 %v1385_v38, %s1116_s8  ;;  %v1075_v33 = vpack.c.bf16 %v743_v42, %v739_v22  ;;  %v343_v38 = vld [vmem:[%s1762_s0 + $0x28] sm:$0x3] }
  0xa9   :  { %v342_v41 = vld [vmem:[%s1762_s0 + $0x20] sm:$0x3] }
  0xaa   :  { %v451_v23 = vpop.permute.xlu1 %450  ;;  %1076 = vmatprep.subr.bf16.mxu1 %v1075_v33  ;;  %v412_v34 = vpop.permute.xlu0 %411 }
  0xab   :  { %v462_v24 = vsel %vm103_vm4, %v451_v23, %v453_v30  ;;  %v419_v13 = vsel %vm56_vm3, %v412_v34, %v414_v21  ;;  %v736_v36 = vld [vmem:[#allocation2 + $0x40] sm:$0xff] }
  0xac   :  { %470 = vst [vmem:[#allocation2 + $0x50] sm:$0xf0] %v462_v24  ;;  %427 = vst [vmem:[#allocation2 + $0x50] sm:$0xf] %v419_v13  ;;  %354 = vrot.lane.b32.xlu1 %v1165_v5, %s1117_s18  ;;  %352 = vrot.lane.b32.xlu0 %v1149_v1, %s1117_s18 }
  0xae   :  { %v496_v26 = vpop.permute.xlu1 %495  ;;  %v457_v29 = vpop.permute.xlu0 %456 }
  0xaf   :  { %v507_v32 = vsel %vm150_vm5, %v496_v26, %v498_v3  ;;  %v464_v35 = vsel %vm103_vm4, %v457_v29, %v459_v14  ;;  %v740_v16 = vld [vmem:[#allocation2 + $0x60] sm:$0xff] }
  0xb0   :  { %515 = vst [vmem:[#allocation2 + $0x70] sm:$0xc0] %v507_v32  ;;  %472 = vst [vmem:[#allocation2 + $0x70] sm:$0x3f] %v464_v35  ;;  %360 = vrot.lane.b32.xlu1 %v343_v38, %s1117_s18  ;;  %358 = vrot.lane.b32.xlu0 %v342_v41, %s1117_s18  ;;  %v1051_v1 = vpack.c.bf16 %v740_v16, %v736_v36 }
  0xb2   :  { %v149_v5 = vpop.permute.xlu1 %148  ;;  %v147_v37 = vpop.permute.xlu0 %146  ;;  %1052 = vmatpush1.bf16.msra.mxu0 %v1051_v1 }
  0xb3   :  { %v154_v39 = vsel %vm150_vm5, %v147_v37, %v149_v5  ;;  %v738_v12 = vld [vmem:[#allocation2 + $0x50] sm:$0xff] }
  0xb4   :  { %706 = vrot.lane.b32.xlu1 %v1154_v2, %s1117_s18  ;;  %704 = vrot.lane.b32.xlu0 %v1144_v0, %s1117_s18 }
  0xb6   :  { %v180_v45 = vpop.permute.xlu1 %179  ;;  %v178_v46 = vpop.permute.xlu0 %177 }
  0xb7   :  { %v189_v48 = vsel %vm187_vm6, %v178_v46, %v180_v45  ;;  %v742_v49 = vld [vmem:[#allocation2 + $0x70] sm:$0xff] }
  0xb8   :  { %712 = vrot.lane.b32.xlu1 %v1032_v40, %s1117_s18  ;;  %710 = vrot.lane.b32.xlu0 %v1031_v44, %s1117_s18  ;;  %v1077_v0 = vpack.c.bf16 %v742_v49, %v738_v12  ;;  %v1053_v2 = vpack.c.bf16 %v189_v48, %v154_v39 }
  0xba   :  { %v506_v51 = vpop.permute.xlu1 %505  ;;  %1078 = vmatpush1.bf16.msra.mxu1 %v1077_v0  ;;  %v504_v54 = vpop.permute.xlu0 %503  ;;  %1054 = vmatprep.subr.bf16.mxu0 %v1053_v2 }
  0xbb   :  { %v510_v28 = vsel %vm150_vm5, %v504_v54, %v506_v51 }
  0xbc   :  { %356 = vrot.lane.b32.xlu1 %v341_v50, %s1117_s18  ;;  %350 = vrot.lane.b32.xlu0 %v1175_v7, %s1117_s18 }
  0xbe   :  { %v536_v56 = vpop.permute.xlu1 %535  ;;  %v534_v9 = vpop.permute.xlu0 %533 }
  0xbf   :  { %v544_v4 = vsel %vm187_vm6, %v534_v9, %v536_v56 }
  0xc0   :  { %708 = vrot.lane.b32.xlu1 %v1030_v55, %s1117_s18  ;;  %702 = vrot.lane.b32.xlu0 %v1170_v6, %s1117_s18  ;;  %v1079_v47 = vpack.c.bf16 %v544_v4, %v510_v28  ;;  %v777_v6 = vld [vmem:[%s1763_s2 + $0x8] sm:$0x3] }
  0xc2   :  { %v176_v7 = vpop.permute.xlu1 %175  ;;  %v145_v60 = vpop.permute.xlu0 %144  ;;  %1080 = vmatprep.subr.bf16.mxu1 %v1079_v47 }
  0xc3   :  { %v188_v20 = vsel %vm187_vm6, %v176_v7, %v178_v46  ;;  %v153_v21 = vsel %vm150_vm5, %v145_v60, %v147_v37 }
  0xc4   :  { %v1055_v61 = vpack.c.bf16 %v188_v20, %v153_v21  ;;  %780 = vperm.xlu0 %1108, %v776_v11   ;;  %785 = vperm.xlu1 %1109, %v777_v6  }
  0xc6   :  { %v532_v25 = vpop.permute.xlu1 %531  ;;  %v502_v30 = vpop.permute.xlu0 %501  ;;  %1056 = vmatpush1.bf16.msra.mxu0 %v1055_v61 }
  0xc7   :  { %v543_v53 = vsel %vm187_vm6, %v532_v25, %v534_v9  ;;  %v509_v58 = vsel %vm150_vm5, %v502_v30, %v504_v54 }
  0xc8   :  { %v1081_v8 = vpack.c.bf16 %v543_v53, %v509_v58 }
  0xca   :  { %v186_v14 = vpop.permute.xlu1 %185  ;;  %v184_v59 = vpop.permute.xlu0 %183  ;;  %1082 = vmatpush1.bf16.msra.mxu1 %v1081_v8 }
  0xcb   :  { %v191_v62 = vsel %vm187_vm6, %v184_v59, %v186_v14 }
  0xcc   :  { %199 = vst [vmem:[#allocation2 + $0xc8] sm:$0x3] %v191_v62 }
  0xce   :  { %v226_v3 = vpop.permute.xlu1 %225  ;;  %v224_v52 = vpop.permute.xlu0 %223 }
  0xcf   :  { %v235_v57 = vsel %vm233_vm7, %v224_v52, %v226_v3 }
  0xd0   :  { %243 = vst [vmem:[#allocation2 + $0xc8] sm:$0xfc] %v235_v57 }
  0xd2   :  { %v232_v15 = vpop.permute.xlu1 %231  ;;  %v230_v18 = vpop.permute.xlu0 %229 }
  0xd3   :  { %v237_v63 = vsel %vm233_vm7, %v230_v18, %v232_v15 }
  0xd4   :  { %245 = vst [vmem:[#allocation2 + $0xe8] sm:$0xf] %v237_v63 }
  0xd6   :  { %v272_v17 = vpop.permute.xlu1 %271  ;;  %v270_v27 = vpop.permute.xlu0 %269 }
  0xd7   :  { %v281_v31 = vsel %vm279_vm8, %v270_v27, %v272_v17  ;;  %v753_v24 = vld [vmem:[#allocation2 + $0xc8] sm:$0xff] }
  0xd8   :  { %289 = vst [vmem:[#allocation2 + $0xe8] sm:$0xf0] %v281_v31 }
  0xda   :  { %v542_v19 = vpop.permute.xlu1 %541  ;;  %v540_v22 = vpop.permute.xlu0 %539 }
  0xdb   :  { %v546_v42 = vsel %vm187_vm6, %v540_v22, %v542_v19 }
  0xdc   :  { %554 = vst [vmem:[#allocation2 + $0xd8] sm:$0x3] %v546_v42 }
  0xde   :  { %v581_v33 = vpop.permute.xlu1 %580  ;;  %v579_v23 = vpop.permute.xlu0 %578 }
  0xdf   :  { %v589_v34 = vsel %vm233_vm7, %v579_v23, %v581_v33  ;;  %v757_v13 = vld [vmem:[#allocation2 + $0xe8] sm:$0xff] }
  0xe0   :  { %597 = vst [vmem:[#allocation2 + $0xd8] sm:$0xfc] %v589_v34  ;;  %v1057_v38 = vpack.c.bf16 %v757_v13, %v753_v24 }
  0xe2   :  { %v587_v41 = vpop.permute.xlu1 %586  ;;  %v585_v26 = vpop.permute.xlu0 %584  ;;  %1058 = vmatprep.subr.bf16.mxu0 %v1057_v38 }
  0xe3   :  { %v591_v29 = vsel %vm233_vm7, %v585_v26, %v587_v41 }
  0xe4   :  { %599 = vst [vmem:[#allocation2 + $0xf8] sm:$0xf] %v591_v29 }
  0xe6   :  { %v626_v32 = vpop.permute.xlu1 %625  ;;  %v624_v35 = vpop.permute.xlu0 %623 }
  0xe7   :  { %v634_v36 = vsel %vm279_vm8, %v624_v35, %v626_v32  ;;  %v755_v46 = vld [vmem:[#allocation2 + $0xd8] sm:$0xff] }
  0xe8   :  { %642 = vst [vmem:[#allocation2 + $0xf8] sm:$0xf0] %v634_v36 }
  0xea   :  { %v222_v16 = vpop.permute.xlu1 %221  ;;  %v182_v1 = vpop.permute.xlu0 %181 }
  0xeb   :  { %v234_v5 = vsel %vm233_vm7, %v222_v16, %v224_v52  ;;  %v190_v37 = vsel %vm187_vm6, %v182_v1, %v184_v59 }
  0xec   :  { %242 = vst [vmem:[#allocation2 + $0xc0] sm:$0xfc] %v234_v5  ;;  %198 = vst [vmem:[#allocation2 + $0xc0] sm:$0x3] %v190_v37 }
  0xee   :  { %v268_v39 = vpop.permute.xlu1 %267  ;;  %v228_v40 = vpop.permute.xlu0 %227 }
  0xef   :  { %v280_v44 = vsel %vm279_vm8, %v268_v39, %v270_v27  ;;  %v236_v45 = vsel %vm233_vm7, %v228_v40, %v230_v18  ;;  %v759_v48 = vld [vmem:[#allocation2 + $0xf8] sm:$0xff] }
  0xf0   :  { %288 = vst [vmem:[#allocation2 + $0xe0] sm:$0xf0] %v280_v44  ;;  %244 = vst [vmem:[#allocation2 + $0xe0] sm:$0xf] %v236_v45  ;;  %v1083_v12 = vpack.c.bf16 %v759_v48, %v755_v46 }
  0xf2   :  { %v577_v49 = vpop.permute.xlu1 %576  ;;  %1084 = vmatprep.subr.bf16.mxu1 %v1083_v12  ;;  %v538_v0 = vpop.permute.xlu0 %537 }
  0xf3   :  { %v588_v2 = vsel %vm233_vm7, %v577_v49, %v579_v23  ;;  %v545_v50 = vsel %vm187_vm6, %v538_v0, %v540_v22  ;;  %v752_v56 = vld [vmem:[#allocation2 + $0xc0] sm:$0xff] }
  0xf4   :  { %596 = vst [vmem:[#allocation2 + $0xd0] sm:$0xfc] %v588_v2  ;;  %553 = vst [vmem:[#allocation2 + $0xd0] sm:$0x3] %v545_v50 }
  0xf6   :  { %v622_v51 = vpop.permute.xlu1 %621  ;;  %v583_v54 = vpop.permute.xlu0 %582 }
  0xf7   :  { %v633_v28 = vsel %vm279_vm8, %v622_v51, %v624_v35  ;;  %v590_v55 = vsel %vm233_vm7, %v583_v54, %v585_v26  ;;  %v756_v9 = vld [vmem:[#allocation2 + $0xe0] sm:$0xff] }
  0xf8   :  { %641 = vst [vmem:[#allocation2 + $0xf0] sm:$0xf0] %v633_v28  ;;  %598 = vst [vmem:[#allocation2 + $0xf0] sm:$0xf] %v590_v55  ;;  %v1059_v4 = vpack.c.bf16 %v756_v9, %v752_v56 }
  0xfa   :  { %v278_v47 = vpop.permute.xlu1 %277  ;;  %v276_v7 = vpop.permute.xlu0 %275  ;;  %1060 = vmatpush1.bf16.msra.mxu0 %v1059_v4 }
  0xfb   :  { %v283_v60 = vsel %vm279_vm8, %v276_v7, %v278_v47  ;;  %v754_v25 = vld [vmem:[#allocation2 + $0xd0] sm:$0xff] }
  0xfc   :  { %291 = vst [vmem:[#allocation2 + $0x108] sm:$0x3f] %v283_v60 }
  0xfe   :  { %v318_v20 = vpop.permute.xlu1 %317  ;;  %v316_v21 = vpop.permute.xlu0 %315 }
  0xff   :  { %v327_v61 = vsel %vm325_vm9, %v316_v21, %v318_v20  ;;  %v758_v30 = vld [vmem:[#allocation2 + $0xf0] sm:$0xff] }
 0x100   :  { %335 = vst [vmem:[#allocation2 + $0x108] sm:$0xc0] %v327_v61  ;;  %v1085_v10 = vpack.c.bf16 %v758_v30, %v754_v25  ;;  %v726_v61 = vld [vmem:[%s1764_s1] sm:$0xff] }
 0x102   :  { %v324_v11 = vpop.permute.xlu1 %323  ;;  %1086 = vmatpush1.bf16.msra.mxu1 %v1085_v10  ;;  %v322_v6 = vpop.permute.xlu0 %321  ;;  %v727_v10 = vld [vmem:[%s1764_s1 + $0x8] sm:$0x3] }
 0x103   :  { %v329_v53 = vsel %vm325_vm9, %v322_v6, %v324_v11 }
 0x106   :  { %v632_v58 = vpop.permute.xlu1 %631  ;;  %v630_v8 = vpop.permute.xlu0 %629 }
 0x107   :  { %v636_v14 = vsel %vm279_vm8, %v630_v8, %v632_v58  ;;  %v761_v59 = vld [vmem:[#allocation2 + $0x108] sm:$0xff] }
 0x108   :  { %644 = vst [vmem:[#allocation2 + $0x118] sm:$0x3f] %v636_v14  ;;  %v1061_v62 = vpack.c.bf16 %v329_v53, %v761_v59 }
 0x10a   :  { %v671_v3 = vpop.permute.xlu1 %670  ;;  %v669_v52 = vpop.permute.xlu0 %668  ;;  %1062 = vmatprep.subr.bf16.mxu0 %v1061_v62 }
 0x10b   :  { %v679_v57 = vsel %vm325_vm9, %v669_v52, %v671_v3 }
 0x10c   :  { %687 = vst [vmem:[#allocation2 + $0x118] sm:$0xc0] %v679_v57 }
 0x10e   :  { %v677_v15 = vpop.permute.xlu1 %676  ;;  %v675_v18 = vpop.permute.xlu0 %674 }
 0x10f   :  { %v681_v63 = vsel %vm325_vm9, %v675_v18, %v677_v15 }
 0x112   :  { %v314_v17 = vpop.permute.xlu1 %313  ;;  %v274_v27 = vpop.permute.xlu0 %273 }
 0x113   :  { %v326_v31 = vsel %vm325_vm9, %v314_v17, %v316_v21  ;;  %v282_v19 = vsel %vm279_vm8, %v274_v27, %v276_v7  ;;  %v763_v22 = vld [vmem:[#allocation2 + $0x118] sm:$0xff] }
 0x114   :  { %334 = vst [vmem:[#allocation2 + $0x100] sm:$0xc0] %v326_v31  ;;  %290 = vst [vmem:[#allocation2 + $0x100] sm:$0x3f] %v282_v19  ;;  %v1087_v42 = vpack.c.bf16 %v681_v63, %v763_v22 }
 0x116   :  { %v628_v33 = vpop.permute.xlu1 %627  ;;  %v320_v23 = vpop.permute.xlu0 %319  ;;  %1088 = vmatprep.subr.bf16.mxu1 %v1087_v42 }
 0x117   :  { %v635_v34 = vsel %vm279_vm8, %v628_v33, %v630_v8  ;;  %v328_v24 = vsel %vm325_vm9, %v320_v23, %v322_v6 }
 0x118   :  { %643 = vst [vmem:[#allocation2 + $0x110] sm:$0x3f] %v635_v34 }
 0x11a   :  { %v673_v13 = vpop.permute.xlu1 %672  ;;  %v667_v38 = vpop.permute.xlu0 %666 }
 0x11b   :  { %v680_v41 = vsel %vm325_vm9, %v673_v13, %v675_v18  ;;  %v678_v26 = vsel %vm325_vm9, %v667_v38, %v669_v52  ;;  %v760_v29 = vld [vmem:[#allocation2 + $0x100] sm:$0xff] }
 0x11c   :  { %686 = vst [vmem:[#allocation2 + $0x110] sm:$0xc0] %v678_v26  ;;  %v1063_v32 = vpack.c.bf16 %v328_v24, %v760_v29 }
 0x11e   :  { %v355_v35 = vpop.permute.xlu1 %354  ;;  %v353_v36 = vpop.permute.xlu0 %352  ;;  %1064 = vmatpush1.bf16.msra.mxu0 %v1063_v32 }
 0x11f   :  { %v364_v16 = vsel %vm362_vm10, %v353_v36, %v355_v35 }
 0x122   :  { %v361_v1 = vpop.permute.xlu1 %360  ;;  %v359_v5 = vpop.permute.xlu0 %358 }
 0x123   :  { %v366_v37 = vsel %vm362_vm10, %v359_v5, %v361_v1  ;;  %v762_v39 = vld [vmem:[#allocation2 + $0x110] sm:$0xff] }
 0x124   :  { %374 = vst [vmem:[#allocation2 + $0x168] sm:$0x3] %v366_v37  ;;  %v1089_v40 = vpack.c.bf16 %v680_v41, %v762_v39 }
 0x126   :  { %v707_v44 = vpop.permute.xlu1 %706  ;;  %1090 = vmatpush1.bf16.msra.mxu1 %v1089_v40  ;;  %v705_v45 = vpop.permute.xlu0 %704 }
 0x127   :  { %v715_v46 = vsel %vm362_vm10, %v705_v45, %v707_v44 }
 0x12a   :  { %v713_v48 = vpop.permute.xlu1 %712  ;;  %v711_v12 = vpop.permute.xlu0 %710 }
 0x12b   :  { %v717_v49 = vsel %vm362_vm10, %v711_v12, %v713_v48  ;;  %v773_v0 = vld [vmem:[#allocation2 + $0x168] sm:$0x3] }
 0x12c   :  { %725 = vst [vmem:[#allocation2 + $0x178] sm:$0x3] %v717_v49  ;;  %v1065_v50 = vpack.c.bf16 %v773_v0, %v364_v16 }
 0x12e   :  { %v357_v51 = vpop.permute.xlu1 %356  ;;  %v351_v54 = vpop.permute.xlu0 %350  ;;  %1067 = vmatprep.subr.msk.bf16.mxu0 %vm1710_vm12, %v1065_v50 }
 0x12f   :  { %v365_v28 = vsel %vm362_vm10, %v357_v51, %v359_v5  ;;  %v363_v55 = vsel %vm362_vm10, %v351_v54, %v353_v36 }
 0x130   :  { %373 = vst [vmem:[#allocation2 + $0x160] sm:$0x3] %v365_v28 }
 0x132   :  { %v709_v56 = vpop.permute.xlu1 %708  ;;  %v703_v9 = vpop.permute.xlu0 %702 }
 0x133   :  { %v716_v4 = vsel %vm362_vm10, %v709_v56, %v711_v12  ;;  %v714_v47 = vsel %vm362_vm10, %v703_v9, %v705_v45  ;;  %v775_v7 = vld [vmem:[#allocation2 + $0x178] sm:$0x3] }
 0x134   :  { %724 = vst [vmem:[#allocation2 + $0x170] sm:$0x3] %v716_v4  ;;  %v1091_v60 = vpack.c.bf16 %v775_v7, %v715_v46 }
 0x136   :  { %1093 = vmatprep.subr.msk.bf16.mxu1 %vm1710_vm12, %v1091_v60 }
 0x137   :  { %v772_v20 = vld [vmem:[#allocation2 + $0x160] sm:$0x3] }
 0x138   :  { %v1068_v21 = vpack.c.bf16 %v772_v20, %v363_v55 }
 0x13a   :  { %1070 = vmatpush1.bf16.msk.msra.mxu0 %vm1710_vm12, %v1068_v21 }
 0x13b   :  { %v774_v25 = vld [vmem:[#allocation2 + $0x170] sm:$0x3] }
 0x13c   :  { %v1094_v30 = vpack.c.bf16 %v774_v25, %v714_v47 }
 0x13d   :  { %1035 = vmatmul.mubr.msk.f32.vlgmr.msra.gmra.mrb[0].mxu0 %vm362_vm10, %v726_v61 }
 0x13e   :  { %1096 = vmatpush1.bf16.msk.msra.mxu1 %vm1710_vm12, %v1094_v30  ;;  %876 = vmatprep.mubr.f32.mxu0 %v1118_v43 }
 0x141   :  { %1039 = vmatmul.mubr.msk.f32.vlgmr.msra.gmra.mrb[0].mxu1 %vm362_vm10, %v726_v61  ;;  %1036 = vmatmul.mubr.msk.f32.gmra.mrb[2].mxu0 %vm362_vm10, %v727_v10 }
 0x142   :  { %953 = vmatprep.mubr.f32.mxu1 %v1118_v43 }
 0x143   :  { %v781_v11 = vpop.permute.xlu0 %780  ;;  %v786_v14 = vpop.permute.xlu1 %785 }
 0x145   :  { %1040 = vmatmul.mubr.msk.f32.gmra.mrb[2].mxu1 %vm362_vm10, %v727_v10 }
 0x210   :  { %v872_v6 = vpop.f32.mrb[0].mxu0 }
 0x211   :  { %v873_v53 = vadd.f32 %v872_v6, %v781_v11  ;;  %v874_v58 = vpop.f32.mrb[1].mxu0 }
 0x212   :  { %v875_v8 = vadd.f32 %v874_v58, %v781_v11 }
 0x213   :  { %v960_v59 = vmax.f32 %v873_v53, 0.0 }
 0x214   :  { %v949_v62 = vpop.f32.mrb[0].mxu1  ;;  %v961_v3 = vmax.f32 %v875_v8, 0.0  ;;  %v878_v52 = vpop.f32.mrb[2].mxu0 }
 0x215   :  { %v950_v57 = vadd.f32 %v949_v62, %v781_v11  ;;  %968 = vst [vmem:[%s1765_s3] sm:$0xff] %v960_v59  ;;  %v951_v15 = vpop.f32.mrb[1].mxu1  ;;  %v879_v18 = vadd.f32 %v878_v52, %v786_v14  ;;  %v880_v43 = vpop.f32.mrb[3].mxu0 }
 0x216   :  { %969 = vst [vmem:[%s1765_s3 + $0x8] sm:$0xff] %v961_v3  ;;  %v952_v63 = vadd.f32 %v951_v15, %v781_v11  ;;  %v881_v17 = vadd.f32 %v880_v43, %v786_v14 }
 0x217   :  { %v962_v27 = vmax.f32 %v950_v57, 0.0  ;;  %v964_v31 = vmax.f32 %v879_v18, 0.0 }
 0x218   :  { %v963_v19 = vmax.f32 %v952_v63, 0.0  ;;  %v965_v22 = vmax.f32 %v881_v17, 0.0  ;;  %v955_v42 = vpop.f32.mrb[2].mxu1 }
 0x219   :  { %1041 = vst [vmem:[%s1765_s3 + $0x20] sm:$0xff] %v962_v27  ;;  %970 = vst [vmem:[%s1765_s3 + $0x10] sm:$0x3] %v964_v31  ;;  %v956_v33 = vadd.f32 %v955_v42, %v786_v14  ;;  %v957_v23 = vpop.f32.mrb[3].mxu1 }
 0x21a   :  { %1042 = vst [vmem:[%s1765_s3 + $0x28] sm:$0xff] %v963_v19  ;;  %971 = vst [vmem:[%s1765_s3 + $0x18] sm:$0x3] %v965_v22  ;;  %v958_v34 = vadd.f32 %v957_v23, %v786_v14 }
 0x21b   :  { %v966_v24 = vmax.f32 %v956_v33, 0.0 }
 0x21c   :  { %v967_v13 = vmax.f32 %v958_v34, 0.0 }
 0x21d   :  { %1043 = vst [vmem:[%s1765_s3 + $0x30] sm:$0x3] %v966_v24 }
 0x21e   :  { %1044 = vst [vmem:[%s1765_s3 + $0x38] sm:$0x3] %v967_v13 }

</bundles_post_ra>
